<compile_context>
chip_gen: v7x
topology: tpu7x:2x2x1
jax: 0.10.0
libtpu: 0.0.40
codegen_flags: <defaults>
</compile_context>

<pallas_src>
import jax
import jax.numpy as jnp
from jax.experimental import pallas as pl
from jax.experimental.pallas import tpu as pltpu

# Small, TPU-friendly shapes consistent with the module's forward (b, t, k).
B, T, K = 2, 8, 128          # k=128 keeps the lane dim aligned; heads=1, depth=1
FF = 4 * K


def vm_transformer_kernel(x_ref, wpack_ref, w2_ref, bpack_ref, out_ref):
    """Single-step kernel: fused qkv for all B*T rows, then last-timestep-only attention,
    residual, FF, residual, fused to_pixels linear."""
    b, t, k = x_ref.shape
    ff = w2_ref.shape[0]

    x3 = x_ref[...]                                    # (B, T, K) f32
    xb = x3.reshape(b * t, k).astype(jnp.bfloat16)     # (B*T, K) — fills the bf16 vreg sublanes

    # --- fused qkv matmul (attention scale already folded into Wq/Wk offline) ---
    qkv = jnp.dot(xb, wpack_ref[:, 0:3 * k],
                  preferred_element_type=jnp.float32)  # (B*T, 3K) f32
    qkv3 = qkv.reshape(b, t, 3 * k)

    # only the last query row is ever consumed (depth=1, module takes x[:, -1, :])
    q_last = qkv3[:, t - 1:t, 0:k]                     # (B, 1, K)
    keys = qkv3[:, :, k:2 * k]                         # (B, T, K)
    vals = qkv3[:, :, 2 * k:3 * k]                     # (B, T, K)

    # --- attention scores for the last query only; stable softmax over dim=2 ---
    dot = jnp.einsum('bqk,btk->bqt', q_last, keys,
                     preferred_element_type=jnp.float32)           # (B, 1, T)
    dot = dot - jnp.max(dot, axis=-1, keepdims=True)
    p = jnp.exp(dot)
    p = p * pl.reciprocal(jnp.sum(p, axis=-1, keepdims=True), approx=True)

    attn = jnp.einsum('bqt,btk->bqk', p, vals,
                      preferred_element_type=jnp.float32)[:, 0, :]  # (B, K)

    # unifyheads
    attn = jnp.dot(attn.astype(jnp.bfloat16), wpack_ref[:, 3 * k:4 * k],
                   preferred_element_type=jnp.float32) + bpack_ref[:, 0:k]

    # residual=True (last timestep only)
    xl = x3[:, t - 1, :] + attn                        # (B, K)

    # --- FF block: Linear(k,4k) -> ReLU -> Linear(4k,k), residual add ---
    h = jnp.dot(xl.astype(jnp.bfloat16), wpack_ref[:, 4 * k:4 * k + ff],
                preferred_element_type=jnp.float32) + bpack_ref[:, k:k + ff]
    h = jnp.maximum(h, 0.0)
    f = jnp.dot(h.astype(jnp.bfloat16), w2_ref[...],
                preferred_element_type=jnp.float32) + bpack_ref[:, k + ff:2 * k + ff]
    xl = xl + f

    # norm=False -> no LayerNorm
    # --- fused to_pixels: one Linear(k,k) ---
    y = jnp.dot(xl.astype(jnp.bfloat16), wpack_ref[:, 4 * k + ff:5 * k + ff],
                preferred_element_type=jnp.float32) + bpack_ref[:, 2 * k + ff:3 * k + ff]
    out_ref[...] = y                                   # (B, K), lane-dense store


def prepare_params(params):
    """Fold/fuse the raw f32 parameters into the kernel's packed bf16/f32 layout."""
    (wq, wk, wv, wu, bu, w1, b1, w2, b2, wp1, bp1, wp2, bp2) = params
    k = wq.shape[0]
    scale = jnp.float32(k) ** jnp.float32(-0.25)

    # qkv fusion with the attention scale baked into Wq and Wk
    wqkv = jnp.concatenate([wq * scale, wk * scale, wv], axis=1)        # (K, 3K)
    # to_pixels fusion: (x @ Wp1 + bp1) @ Wp2 + bp2 == x @ (Wp1 @ Wp2) + (bp1 @ Wp2 + bp2)
    wp = wp1 @ wp2                                                      # (K, K)
    bp = bp1 @ wp2 + bp2                                                # (1, K)

    # Pack the K-major weights into one bf16 slab; lane offsets 0 / 3K / 4K / 4K+FF
    wpack = jnp.concatenate([wqkv, wu, w1, wp], axis=1).astype(jnp.bfloat16)   # (K, 1152)
    # Pack all biases into one f32 row; lane offsets 0 / K / K+FF / 2K+FF
    bpack = jnp.concatenate([bu, b1, b2, bp], axis=1)                          # (1, 896)

    return (wpack, w2.astype(jnp.bfloat16), bpack)


def vm_transformer(x, kernel_params):
    wpack, w2, bpack = kernel_params
    b, t, k = x.shape
    ff = w2.shape[0]
    wcols = wpack.shape[1]
    bcols = bpack.shape[1]

    return pl.pallas_call(
        vm_transformer_kernel,
        out_shape=jax.ShapeDtypeStruct((b, k), jnp.float32),
        grid_spec=pltpu.PrefetchScalarGridSpec(
            num_scalar_prefetch=0,
            grid=(1,),                                          # collapsed: one step, no per-step overhead
            in_specs=[
                pl.BlockSpec((b, t, k), lambda i: (0, 0, 0)),   # full x slab
                pl.BlockSpec((k, wcols), lambda i: (0, 0)),     # packed [Wqkv|Wu|W1|Wp] (bf16)
                pl.BlockSpec((ff, k), lambda i: (0, 0)),        # W2 (bf16)
                pl.BlockSpec((1, bcols), lambda i: (0, 0)),     # packed [bu|b1|b2|bp] (f32)
            ],
            out_specs=pl.BlockSpec((b, k), lambda i: (0, 0)),
        ),
        compiler_params=pltpu.CompilerParams(
            dimension_semantics=("arbitrary",)),
    )(x, wpack, w2, bpack)


def init_params(key):
    """Deterministic synthetic f32 parameters; weights stored (in, out), biases (1, out)."""
    ks = jax.random.split(key, 13)
    s = 0.02
    wq = s * jax.random.normal(ks[0], (K, K), jnp.float32)
    wk = s * jax.random.normal(ks[1], (K, K), jnp.float32)
    wv = s * jax.random.normal(ks[2], (K, K), jnp.float32)
    wu = s * jax.random.normal(ks[3], (K, K), jnp.float32)
    bu = s * jax.random.normal(ks[4], (1, K), jnp.float32)
    w1 = s * jax.random.normal(ks[5], (K, FF), jnp.float32)
    b1 = s * jax.random.normal(ks[6], (1, FF), jnp.float32)
    w2 = s * jax.random.normal(ks[7], (FF, K), jnp.float32)
    b2 = s * jax.random.normal(ks[8], (1, K), jnp.float32)
    wp1 = s * jax.random.normal(ks[9], (K, K), jnp.float32)
    bp1 = s * jax.random.normal(ks[10], (1, K), jnp.float32)
    wp2 = s * jax.random.normal(ks[11], (K, K), jnp.float32)
    bp2 = s * jax.random.normal(ks[12], (1, K), jnp.float32)
    return (wq, wk, wv, wu, bu, w1, b1, w2, b2, wp1, bp1, wp2, bp2)


def reference(x, params):
    """Pure-JAX f32 reference mirroring the PyTorch forward (heads=1, residual, ff, no norm)."""
    (wq, wk, wv, wu, bu, w1, b1, w2, b2, wp1, bp1, wp2, bp2) = params
    b, t, k = x.shape
    scale = k ** (-0.25)
    q = (x @ wq) * scale
    kp = (x @ wk) * scale
    v = x @ wv
    dot = jnp.einsum('btk,bsk->bts', q, kp)
    p = jax.nn.softmax(dot, axis=2)
    attn = jnp.einsum('bts,bsk->btk', p, v) @ wu + bu
    x = x + attn
    h = jnp.maximum(x @ w1 + b1, 0.0)
    x = x + (h @ w2 + b2)
    last = x[:, -1, :]
    y = last @ wp1 + bp1[0]
    y = y @ wp2 + bp2[0]
    return y


if __name__ == "__main__":
    key = jax.random.PRNGKey(0)
    kx, kp = jax.random.split(key)
    x = jax.random.normal(kx, (B, T, K), jnp.float32)
    params = init_params(kp)
    kernel_params = prepare_params(params)

    out = vm_transformer(x, kernel_params)
    out = jax.block_until_ready(out)

    ref = reference(x, params)
    assert out.shape == (B, K)
    # bf16 weights + approx reciprocal in the kernel vs. f32 reference -> loosened tolerance
    assert jnp.allclose(out, ref, atol=2e-2, rtol=2e-2), "mismatch vs JAX reference"

    print("KERNEL_OK")
</pallas_src>

<mosaic_0001>
module attributes {stable_mosaic.version = 11 : i64} {
  func.func @vm_transformer_kernel(%arg0: i32, %arg1: memref<2x8x128xf32, #tpu.memory_space<vmem>>, %arg2: memref<128x1152xbf16, #tpu.memory_space<vmem>>, %arg3: memref<512x128xbf16, #tpu.memory_space<vmem>>, %arg4: memref<1x896xf32, #tpu.memory_space<vmem>>, %arg5: memref<2x128xf32, #tpu.memory_space<vmem>>) attributes {dimension_semantics = [#tpu.dimension_semantics<arbitrary>], iteration_bounds = array<i64: 1>, scalar_prefetch = 0 : i64, scratch_operands = 0 : i64, tpu.core_type = #tpu.core_type<tc>, window_params = [{pipeline_mode = #tpu.pipeline_mode<synchronous>, transform_indices = @transform_0, window_bounds = array<i64: 2, 8, 128>}, {pipeline_mode = #tpu.pipeline_mode<synchronous>, transform_indices = @transform_1, window_bounds = array<i64: 128, 1152>}, {pipeline_mode = #tpu.pipeline_mode<synchronous>, transform_indices = @transform_2, window_bounds = array<i64: 512, 128>}, {pipeline_mode = #tpu.pipeline_mode<synchronous>, transform_indices = @transform_3, window_bounds = array<i64: 1, 896>}, {pipeline_mode = #tpu.pipeline_mode<synchronous>, transform_indices = @transform_4, window_bounds = array<i64: 2, 128>}]} {
    %c0 = arith.constant 0 : index
    %c0_0 = arith.constant 0 : index
    %c0_1 = arith.constant 0 : index
    %0 = vector.load %arg1[%c0, %c0_0, %c0_1] : memref<2x8x128xf32, #tpu.memory_space<vmem>>, vector<2x8x128xf32>
    %1 = vector.shape_cast %0 : vector<2x8x128xf32> to vector<16x128xf32>
    %2 = arith.truncf %1 : vector<16x128xf32> to vector<16x128xbf16>
    %c0_2 = arith.constant 0 : index
    %c0_3 = arith.constant 0 : index
    %3 = vector.load %arg2[%c0_2, %c0_3] : memref<128x1152xbf16, #tpu.memory_space<vmem>>, vector<128x384xbf16>
    %cst = arith.constant dense<0.000000e+00> : vector<16x384xf32>
    %4 = tpu.matmul %2, %3, %cst {dimension_numbers = #tpu.dot_dimension_numbers<[1], [0], [0], [1], [0, 0, 1, 1], [], []>} : vector<16x128xbf16>, vector<128x384xbf16>, vector<16x384xf32> -> vector<16x384xf32>
    %5 = vector.shape_cast %4 : vector<16x384xf32> to vector<2x8x384xf32>
    %6 = vector.extract_strided_slice %5 {offsets = [0, 7, 0], sizes = [2, 1, 128], strides = [1, 1, 1]} : vector<2x8x384xf32> to vector<2x1x128xf32>
    %7 = vector.extract_strided_slice %5 {offsets = [0, 0, 128], sizes = [2, 8, 128], strides = [1, 1, 1]} : vector<2x8x384xf32> to vector<2x8x128xf32>
    %8 = vector.extract_strided_slice %5 {offsets = [0, 0, 256], sizes = [2, 8, 128], strides = [1, 1, 1]} : vector<2x8x384xf32> to vector<2x8x128xf32>
    "tpu.trace_start"() <{level = 10 : i32, message = "bqk,btk->bqt"}> : () -> ()
    %cst_4 = arith.constant dense<0.000000e+00> : vector<2x1x8xf32>
    %9 = tpu.matmul %6, %7, %cst_4 {dimension_numbers = #tpu.dot_dimension_numbers<[2], [2], [1], [1], [0, 0, 0, 1, 1, 1], [0], [0]>} : vector<2x1x128xf32>, vector<2x8x128xf32>, vector<2x1x8xf32> -> vector<2x1x8xf32>
    "tpu.trace_stop"() : () -> ()
    %cst_5 = arith.constant dense<0xFF800000> : vector<2x1xf32>
    %10 = vector.multi_reduction <maximumf>, %9, %cst_5 [2] : vector<2x1x8xf32> to vector<2x1xf32>
    %11 = vector.shape_cast %10 : vector<2x1xf32> to vector<2x1x1xf32>
    %12 = vector.broadcast %11 : vector<2x1x1xf32> to vector<2x1x8xf32>
    %13 = arith.subf %9, %12 : vector<2x1x8xf32>
    %14 = math.exp %13 : vector<2x1x8xf32>
    %cst_6 = arith.constant dense<0.000000e+00> : vector<2x1xf32>
    %15 = vector.multi_reduction <add>, %14, %cst_6 [2] : vector<2x1x8xf32> to vector<2x1xf32>
    %16 = vector.shape_cast %15 : vector<2x1xf32> to vector<2x1x1xf32>
    %17 = tpu.reciprocal %16 {approx = true} : vector<2x1x1xf32> -> vector<2x1x1xf32>
    %18 = vector.broadcast %17 : vector<2x1x1xf32> to vector<2x1x8xf32>
    %19 = arith.mulf %14, %18 : vector<2x1x8xf32>
    "tpu.trace_start"() <{level = 10 : i32, message = "bqt,btk->bqk"}> : () -> ()
    %cst_7 = arith.constant dense<0.000000e+00> : vector<2x1x128xf32>
    %20 = tpu.matmul %19, %8, %cst_7 {dimension_numbers = #tpu.dot_dimension_numbers<[2], [1], [1], [2], [0, 0, 0, 1, 1, 2], [0], [0]>} : vector<2x1x8xf32>, vector<2x8x128xf32>, vector<2x1x128xf32> -> vector<2x1x128xf32>
    "tpu.trace_stop"() : () -> ()
    %21 = vector.shape_cast %20 : vector<2x1x128xf32> to vector<2x128xf32>
    %22 = arith.truncf %21 : vector<2x128xf32> to vector<2x128xbf16>
    %c0_8 = arith.constant 0 : index
    %c384 = arith.constant 384 : index
    %23 = vector.load %arg2[%c0_8, %c384] : memref<128x1152xbf16, #tpu.memory_space<vmem>>, vector<128x128xbf16>
    %cst_9 = arith.constant dense<0.000000e+00> : vector<2x128xf32>
    %24 = tpu.matmul %22, %23, %cst_9 {dimension_numbers = #tpu.dot_dimension_numbers<[1], [0], [0], [1], [0, 0, 1, 1], [], []>} : vector<2x128xbf16>, vector<128x128xbf16>, vector<2x128xf32> -> vector<2x128xf32>
    %c0_10 = arith.constant 0 : index
    %c0_11 = arith.constant 0 : index
    %25 = vector.load %arg4[%c0_10, %c0_11] : memref<1x896xf32, #tpu.memory_space<vmem>>, vector<1x128xf32>
    %26 = vector.broadcast %25 : vector<1x128xf32> to vector<2x128xf32>
    %27 = arith.addf %24, %26 : vector<2x128xf32>
    %28 = vector.extract_strided_slice %0 {offsets = [0, 7, 0], sizes = [2, 1, 128], strides = [1, 1, 1]} : vector<2x8x128xf32> to vector<2x1x128xf32>
    %29 = vector.shape_cast %28 : vector<2x1x128xf32> to vector<2x128xf32>
    %30 = arith.addf %29, %27 : vector<2x128xf32>
    %31 = arith.truncf %30 : vector<2x128xf32> to vector<2x128xbf16>
    %c0_12 = arith.constant 0 : index
    %c512 = arith.constant 512 : index
    %32 = vector.load %arg2[%c0_12, %c512] : memref<128x1152xbf16, #tpu.memory_space<vmem>>, vector<128x512xbf16>
    %cst_13 = arith.constant dense<0.000000e+00> : vector<2x512xf32>
    %33 = tpu.matmul %31, %32, %cst_13 {dimension_numbers = #tpu.dot_dimension_numbers<[1], [0], [0], [1], [0, 0, 1, 1], [], []>} : vector<2x128xbf16>, vector<128x512xbf16>, vector<2x512xf32> -> vector<2x512xf32>
    %c0_14 = arith.constant 0 : index
    %c128 = arith.constant 128 : index
    %34 = vector.load %arg4[%c0_14, %c128] : memref<1x896xf32, #tpu.memory_space<vmem>>, vector<1x512xf32>
    %35 = vector.broadcast %34 : vector<1x512xf32> to vector<2x512xf32>
    %36 = arith.addf %33, %35 : vector<2x512xf32>
    %cst_15 = arith.constant 0.000000e+00 : f32
    %37 = vector.broadcast %cst_15 : f32 to vector<2x512xf32>
    %38 = arith.maximumf %36, %37 : vector<2x512xf32>
    %39 = arith.truncf %38 : vector<2x512xf32> to vector<2x512xbf16>
    %c0_16 = arith.constant 0 : index
    %c0_17 = arith.constant 0 : index
    %40 = vector.load %arg3[%c0_16, %c0_17] : memref<512x128xbf16, #tpu.memory_space<vmem>>, vector<512x128xbf16>
    %cst_18 = arith.constant dense<0.000000e+00> : vector<2x128xf32>
    %41 = tpu.matmul %39, %40, %cst_18 {dimension_numbers = #tpu.dot_dimension_numbers<[1], [0], [0], [1], [0, 0, 1, 1], [], []>} : vector<2x512xbf16>, vector<512x128xbf16>, vector<2x128xf32> -> vector<2x128xf32>
    %c0_19 = arith.constant 0 : index
    %c640 = arith.constant 640 : index
    %42 = vector.load %arg4[%c0_19, %c640] : memref<1x896xf32, #tpu.memory_space<vmem>>, vector<1x128xf32>
    %43 = vector.broadcast %42 : vector<1x128xf32> to vector<2x128xf32>
    %44 = arith.addf %41, %43 : vector<2x128xf32>
    %45 = arith.addf %30, %44 : vector<2x128xf32>
    %46 = arith.truncf %45 : vector<2x128xf32> to vector<2x128xbf16>
    %c0_20 = arith.constant 0 : index
    %c1024 = arith.constant 1024 : index
    %47 = vector.load %arg2[%c0_20, %c1024] : memref<128x1152xbf16, #tpu.memory_space<vmem>>, vector<128x128xbf16>
    %cst_21 = arith.constant dense<0.000000e+00> : vector<2x128xf32>
    %48 = tpu.matmul %46, %47, %cst_21 {dimension_numbers = #tpu.dot_dimension_numbers<[1], [0], [0], [1], [0, 0, 1, 1], [], []>} : vector<2x128xbf16>, vector<128x128xbf16>, vector<2x128xf32> -> vector<2x128xf32>
    %c0_22 = arith.constant 0 : index
    %c768 = arith.constant 768 : index
    %49 = vector.load %arg4[%c0_22, %c768] : memref<1x896xf32, #tpu.memory_space<vmem>>, vector<1x128xf32>
    %50 = vector.broadcast %49 : vector<1x128xf32> to vector<2x128xf32>
    %51 = arith.addf %48, %50 : vector<2x128xf32>
    %c0_23 = arith.constant 0 : index
    %c0_24 = arith.constant 0 : index
    %52 = vector.load %arg5[%c0_23, %c0_24] : memref<2x128xf32, #tpu.memory_space<vmem>>, vector<2x128xf32>
    tpu.vector_store %arg5[%c0_23, %c0_24], %51 {strides = array<i32>} : memref<2x128xf32, #tpu.memory_space<vmem>>, vector<2x128xf32>,
    return
  }
  func.func @transform_0(%arg0: i32) -> (i32, i32, i32) {
    %c0_i32 = arith.constant 0 : i32
    %c0_i32_0 = arith.constant 0 : i32
    %c0_i32_1 = arith.constant 0 : i32
    %c0_i32_2 = arith.constant 0 : i32
    return %c0_i32, %c0_i32_0, %c0_i32_1 : i32, i32, i32
  }
  func.func @transform_1(%arg0: i32) -> (i32, i32) {
    %c0_i32 = arith.constant 0 : i32
    %c0_i32_0 = arith.constant 0 : i32
    %c0_i32_1 = arith.constant 0 : i32
    return %c0_i32, %c0_i32_0 : i32, i32
  }
  func.func @transform_2(%arg0: i32) -> (i32, i32) {
    %c0_i32 = arith.constant 0 : i32
    %c0_i32_0 = arith.constant 0 : i32
    %c0_i32_1 = arith.constant 0 : i32
    return %c0_i32, %c0_i32_0 : i32, i32
  }
  func.func @transform_3(%arg0: i32) -> (i32, i32) {
    %c0_i32 = arith.constant 0 : i32
    %c0_i32_0 = arith.constant 0 : i32
    %c0_i32_1 = arith.constant 0 : i32
    return %c0_i32, %c0_i32_0 : i32, i32
  }
  func.func @transform_4(%arg0: i32) -> (i32, i32) {
    %c0_i32 = arith.constant 0 : i32
    %c0_i32_0 = arith.constant 0 : i32
    %c0_i32_1 = arith.constant 0 : i32
    return %c0_i32, %c0_i32_0 : i32, i32
  }
}

</mosaic_0001>

<bundles_post_ra>
// kernel: tpu_custom_call.1
= control target key start
LH: loop header
LB: loop body
LE: loop exit
PB: predicated region body
PF: predicated region fallthrough
CT: control target
= control target key end

     0   :  { %9 = vsyncpa [#allocation3], 0  ;;  %s2235_s0 = inlined_call_operand.hbm [shape: f32[2,8,128], index: 0, kind: input, shape index: {}]   ;;  %s2236_s1 = inlined_call_operand.hbm [shape: bf16[128,1152], index: 1, kind: input, shape index: {}]   ;;  %s2237_s2 = inlined_call_operand.hbm [shape: bf16[512,128], index: 2, kind: input, shape index: {}]   ;;  %s2238_s3 = inlined_call_operand.vmem [shape: f32[1,896], index: 3, kind: input, shape index: {}]   ;;  %s2239_s4 = inlined_call_operand.hbm [shape: f32[2,128], index: 4, kind: output, shape index: {}]  }
   0x1   :  { %10 = vsyncpa [#allocation6], 0 }
   0x2   :  { %11 = vsyncpa [#allocation4], 0  ;;  %s2067_s15 = smov [#allocation5]   ;;  %s1973_s19 = scalar_lea.hbm %s2236_s1, 9216 }
   0x3   :  { %s29_s16 = sshll.u32 %s2067_s15, 4  ;;  %p1974_p0 = scmp.ne.s32.totalorder %s2236_s1, %s1973_s19  ;;  %s30_s16 = int_to_ptr.vmem [resolvable:$true] %s29_s16 }
   0x4   :  { %p1977_p1 = scmp.lt.u32.totalorder %s1973_s19, %s2236_s1 }
   0x6   :  { %p1979_p2 = pnand %p1977_p1, %p1974_p0 }
   0x8   :  { %1982 = shalt.err (!%p1979_p2)
}
   0x9   :  { %s1983_s24 = scalar_lea.vmem %s30_s16, 9216  ;;  %p1988_p4 = scmp.lt.s32.totalorder %s30_s16, %s30_s16 }
   0xa   :  { %p1984_p3 = scmp.ne.s32.totalorder %s30_s16, %s1983_s24  ;;  %p1989_p5 = scmp.lt.s32.totalorder %s1983_s24, %s1983_s24 }
   0xc   :  { %p1990_p6 = por %p1989_p5, %p1988_p4 }
   0xe   :  { %p1991_p7 = pnand %p1990_p6, %p1984_p3 }
  0x10   :  { %1994 = shalt.err (!%p1991_p7)
}
  0x11   :  { %s2068_s25 = smov 576   ;;  %s2069_s26 = smov 36  }
  0x12   :  { %35 = dma.hbm_to_vmem [thread:$0]  %s2236_s1, 9216, %s30_s16, [#allocation6], %s2068_s25, %s2068_s25, %s2069_s26  }
  0x13   :  { %s2070_s29 = smov [#allocation2]   ;;  %s1995_s7 = scalar_lea.hbm %s2235_s0, 256 }
  0x14   :  { %s17_s30 = sshll.u32 %s2070_s29, 4  ;;  %p1996_p8 = scmp.ne.s32.totalorder %s2235_s0, %s1995_s7  ;;  %s18_s30 = int_to_ptr.vmem [resolvable:$true] %s17_s30 }
  0x15   :  { %p1999_p9 = scmp.lt.u32.totalorder %s1995_s7, %s2235_s0 }
  0x17   :  { %p2001_p10 = pnand %p1999_p9, %p1996_p8 }
  0x19   :  { %2004 = shalt.err (!%p2001_p10)
}
  0x1a   :  { %s2005_s12 = scalar_lea.vmem %s18_s30, 256  ;;  %p2010_p12 = scmp.lt.s32.totalorder %s18_s30, %s18_s30 }
  0x1b   :  { %p2006_p11 = scmp.ne.s32.totalorder %s18_s30, %s2005_s12  ;;  %p2011_p13 = scmp.lt.s32.totalorder %s2005_s12, %s2005_s12 }
  0x1d   :  { %p2012_p0 = por %p2011_p13, %p2010_p12 }
  0x1f   :  { %p2013_p1 = pnand %p2012_p0, %p2006_p11 }
  0x21   :  { %2016 = shalt.err (!%p2013_p1)
}
  0x22   :  { %s2071_s1 = smov 128   ;;  %s2072_s13 = smov 8  }
  0x23   :  { %23 = dma.hbm_to_vmem [thread:$0]  %s2235_s0, 256, %s18_s30, [#allocation3], %s2071_s1, %s2071_s1, %s2072_s13  }
  0x24   :  { %s2073_s16 = smov [#allocation7]   ;;  %s2017_s20 = scalar_lea.hbm %s2237_s2, 4096 }
  0x25   :  { %s41_s17 = sshll.u32 %s2073_s16, 4  ;;  %p2018_p2 = scmp.ne.s32.totalorder %s2237_s2, %s2017_s20  ;;  %s42_s17 = int_to_ptr.vmem [resolvable:$true] %s41_s17 }
  0x26   :  { %p2021_p3 = scmp.lt.u32.totalorder %s2017_s20, %s2237_s2 }
  0x28   :  { %p2023_p4 = pnand %p2021_p3, %p2018_p2 }
  0x2a   :  { %2026 = shalt.err (!%p2023_p4)
}
  0x2b   :  { %s2027_s25 = scalar_lea.vmem %s42_s17, 4096  ;;  %p2032_p6 = scmp.lt.s32.totalorder %s42_s17, %s42_s17 }
  0x2c   :  { %p2028_p5 = scmp.ne.s32.totalorder %s42_s17, %s2027_s25  ;;  %p2033_p7 = scmp.lt.s32.totalorder %s2027_s25, %s2027_s25 }
  0x2e   :  { %p2034_p8 = por %p2033_p7, %p2032_p6 }
  0x30   :  { %p2035_p9 = pnand %p2034_p8, %p2028_p5 }
  0x32   :  { %2038 = shalt.err (!%p2035_p9)
}
  0x33   :  { %s2074_s0 = smov 64   ;;  %s2075_s26 = smov 4  }
  0x34   :  { %47 = dma.hbm_to_vmem [thread:$0]  %s2237_s2, 4096, %s42_s17, [#allocation6], %s2074_s0, %s2074_s0, %s2075_s26  }
  0x35   :  { %2061 = dma.done.wait [#allocation3], 256  }
  0x36   :  { %2062 = vsyncadd [#allocation3], 4294967040 }
  0x37   :  { %2063 = dma.done.wait [#allocation6], 13312  }
  0x38   :  { %2064 = vsyncadd [#allocation6], 4294953984  ;;  %v2076_v0 = vmov 0   ;;  %v2077_v1 = vmov 0.0   ;;  %vm2078_vm0 = vmmov 0   ;;  %v2148_v23 = vld [vmem:[#allocation2] sm:$0xff] }
  0x39   :  { %255 = vmatprep.mubr.bf16.mxu0 %v2076_v0  ;;  %1744 = vmatprep.subr.bf16.mxu1 %v2077_v1  ;;  %v1837_v2 = vld [vmem:[#allocation5 + $0x4] ss:$36 sps:$4 sm:$0xff]   ;;  %v1840_v4 = vld [vmem:[#allocation5 + $0x4c] ss:$36 sps:$4 sm:$0xff]   ;;  %v1843_v6 = vld [vmem:[#allocation5 + $0x94] ss:$36 sps:$4 sm:$0xff]  }
  0x3a   :  { %1760 = vmatprep.mubr.msk.bf16.mxu1 %vm2078_vm0, %v2077_v1  ;;  %v1839_v3 = vld [vmem:[#allocation5] ss:$36 sps:$4 sm:$0xff]   ;;  %223 = vmatprep.subr.bf16.mxu0 %v1837_v2  ;;  %v1842_v5 = vld [vmem:[#allocation5 + $0x48] ss:$36 sps:$4 sm:$0xff]   ;;  %v1845_v7 = vld [vmem:[#allocation5 + $0x90] ss:$36 sps:$4 sm:$0xff]  }
  0x3b   :  { %224 = vmatpush1.bf16.msra.mxu0 %v1839_v3  ;;  %v1846_v8 = vld [vmem:[#allocation5 + $0xdc] ss:$36 sps:$4 sm:$0xff]   ;;  %v1849_v10 = vld [vmem:[#allocation5 + $0x124] ss:$36 sps:$4 sm:$0xff]   ;;  %v1862_v12 = vld [vmem:[#allocation5 + $0x50] ss:$36 sps:$4 sm:$0xff]  }
  0x3c   :  { %225 = vmatprep.subr.bf16.mxu0 %v1840_v4  ;;  %v1848_v9 = vld [vmem:[#allocation5 + $0xd8] ss:$36 sps:$4 sm:$0xff]   ;;  %v1861_v11 = vld [vmem:[#allocation5 + $0x8] ss:$36 sps:$4 sm:$0xff]   ;;  %v1851_v13 = vld [vmem:[#allocation5 + $0x120] ss:$36 sps:$4 sm:$0xff]  }
  0x3d   :  { %1745 = vmatpush3.bf16.msra.mxu1 %v1861_v11  ;;  %v1852_v14 = vld [vmem:[#allocation5 + $0x16c] ss:$36 sps:$4 sm:$0xff]   ;;  %v1863_v16 = vld [vmem:[#allocation5 + $0x98] ss:$36 sps:$4 sm:$0xff]   ;;  %v1864_v18 = vld [vmem:[#allocation5 + $0xe0] ss:$36 sps:$4 sm:$0xff]  }
  0x3e   :  { %1746 = vmatprep.subr.bf16.mxu1 %v2077_v1  ;;  %v1854_v15 = vld [vmem:[#allocation5 + $0x168] ss:$36 sps:$4 sm:$0xff]   ;;  %v1855_v17 = vld [vmem:[#allocation5 + $0x1b4] ss:$36 sps:$4 sm:$0xff]   ;;  %v1858_v20 = vld [vmem:[#allocation5 + $0x1fc] ss:$36 sps:$4 sm:$0xff]  }
  0x3f   :  { %226 = vmatpush1.bf16.msra.mxu0 %v1842_v5  ;;  %v1857_v19 = vld [vmem:[#allocation5 + $0x1b0] ss:$36 sps:$4 sm:$0xff]   ;;  %v1865_v21 = vld [vmem:[#allocation5 + $0x128] ss:$36 sps:$4 sm:$0xff]   ;;  %v1860_v22 = vld [vmem:[#allocation5 + $0x1f8] ss:$36 sps:$4 sm:$0xff]  }
  0x40   :  { %227 = vmatprep.subr.bf16.mxu0 %v1843_v6  ;;  %v2150_v24 = vld [vmem:[#allocation2 + $0x8] sm:$0xff]  ;;  %v1866_v25 = vld [vmem:[#allocation5 + $0x170] ss:$36 sps:$4 sm:$0xff]   ;;  %v1868_v28 = vld [vmem:[#allocation5 + $0x200] ss:$36 sps:$4 sm:$0xff]   ;;  %vm453_vm1 = vcmask 57344  }
  0x41   :  { %1747 = vmatpush3.bf16.msra.mxu1 %v1862_v12  ;;  %v62_v26 = vpack.c.bf16 %v2150_v24, %v2148_v23  ;;  %v1867_v27 = vld [vmem:[#allocation5 + $0x1b8] ss:$36 sps:$4 sm:$0xff]   ;;  %vm476_vm2 = vcmask 64512   ;;  %v1869_v60 = vld [vmem:[#allocation5 + $0xc] ss:$36 sps:$4 sm:$0xff]   ;;  %vm653_vm3 = vcmask 1041409  }
  0x42   :  { %1748 = vmatprep.subr.bf16.mxu1 %v2077_v1  ;;  %v1870_v62 = vld [vmem:[#allocation5 + $0x54] ss:$36 sps:$4 sm:$0xff]   ;;  %v1871_v63 = vld [vmem:[#allocation5 + $0x9c] ss:$36 sps:$4 sm:$0xff]   ;;  %v1872_v2 = vld [vmem:[#allocation5 + $0xe4] ss:$36 sps:$4 sm:$0xff]  }
  0x43   :  { %228 = vmatpush1.bf16.msra.mxu0 %v1845_v7  ;;  %v1873_v3 = vld [vmem:[#allocation5 + $0x12c] ss:$36 sps:$4 sm:$0xff]   ;;  %v1874_v4 = vld [vmem:[#allocation5 + $0x174] ss:$36 sps:$4 sm:$0xff]   ;;  %v1875_v5 = vld [vmem:[#allocation5 + $0x1bc] ss:$36 sps:$4 sm:$0xff]  }
  0x44   :  { %229 = vmatprep.subr.bf16.mxu0 %v1846_v8  ;;  %v1876_v6 = vld [vmem:[#allocation5 + $0x204] ss:$36 sps:$4 sm:$0xff]   ;;  %v1877_v7 = vld [vmem:[#allocation5 + $0x10] ss:$36 sps:$4 sm:$0xff]   ;;  %v1883_v11 = vld [vmem:[#allocation5 + $0x58] ss:$36 sps:$4 sm:$0xff]  }
  0x45   :  { %1749 = vmatpush3.bf16.msra.mxu1 %v1863_v16  ;;  %v1879_v8 = vld [vmem:[#allocation5 + $0x14] ss:$36 sps:$4 sm:$0xff]   ;;  %v1891_v12 = vld [vmem:[#allocation5 + $0xa4] ss:$36 sps:$4 sm:$0xff]   ;;  %s2079_s10 = smov [#allocation8]  }
  0x46   :  { %1750 = vmatprep.subr.bf16.mxu1 %v2077_v1  ;;  %s1546_s11 = sshll.u32 %s2079_s10, 4  ;;  %s1547_s11 = int_to_ptr.vmem [resolvable:$true] %s1546_s11 }
  0x47   :  { %230 = vmatpush1.bf16.msra.mxu0 %v1848_v9  ;;  %v1882_v9 = vld [vmem:[#allocation5 + $0x1c] ss:$36 sps:$4 sm:$0xff]   ;;  %s2039_s12 = scalar_lea.vmem %s1547_s11, 32  ;;  %p2044_p11 = scmp.lt.s32.totalorder %s1547_s11, %s1547_s11 }
  0x48   :  { %231 = vmatprep.subr.bf16.mxu0 %v1849_v10  ;;  %v1885_v10 = vld [vmem:[#allocation5 + $0x5c] ss:$36 sps:$4 sm:$0xff]   ;;  %p2040_p10 = scmp.ne.s32.totalorder %s1547_s11, %s2039_s12  ;;  %p2045_p12 = scmp.lt.s32.totalorder %s2039_s12, %s2039_s12 }
  0x49   :  { %1751 = vmatpush3.bf16.msra.mxu1 %v1864_v18 }
  0x4a   :  { %1752 = vmatprep.subr.bf16.mxu1 %v2077_v1  ;;  %p2046_p13 = por %p2045_p12, %p2044_p11 }
  0x4b   :  { %232 = vmatpush1.bf16.msra.mxu0 %v1851_v13  ;;  %v1889_v13 = vld [vmem:[#allocation5 + $0xa0] ss:$36 sps:$4 sm:$0xff]  }
  0x4c   :  { %233 = vmatprep.subr.bf16.mxu0 %v1852_v14  ;;  %v1897_v14 = vld [vmem:[#allocation5 + $0xec] ss:$36 sps:$4 sm:$0xff]   ;;  %p2047_p0 = pnand %p2046_p13, %p2040_p10 }
  0x4d   :  { %1753 = vmatpush3.bf16.msra.mxu1 %v1865_v21 }
  0x4e   :  { %1754 = vmatprep.subr.bf16.mxu1 %v2077_v1 }
  0x4f   :  { %234 = vmatpush1.bf16.msra.mxu0 %v1854_v15  ;;  %v1895_v15 = vld [vmem:[#allocation5 + $0xe8] ss:$36 sps:$4 sm:$0xff]  }
  0x50   :  { %235 = vmatprep.subr.bf16.mxu0 %v1855_v17 }
  0x51   :  { %1755 = vmatpush3.bf16.msra.mxu1 %v1866_v25 }
  0x52   :  { %1756 = vmatprep.subr.bf16.mxu1 %v2077_v1 }
  0x53   :  { %236 = vmatpush1.bf16.msra.mxu0 %v1857_v19 }
  0x54   :  { %237 = vmatprep.subr.bf16.mxu0 %v1858_v20 }
  0x55   :  { %1757 = vmatpush3.bf16.msra.mxu1 %v1867_v27 }
  0x56   :  { %1758 = vmatprep.subr.bf16.mxu1 %v2077_v1 }
  0x57   :  { %238 = vmatpush1.bf16.msra.mxu0 %v1860_v22 }
  0x58   :  { %1764 = vmatprep.subr.mxu0 %v2077_v1 }
  0x59   :  { %1759 = vmatpush3.bf16.msra.mxu1 %v1868_v28  ;;  %v1880_v28 = vld [vmem:[#allocation5 + $0x18] ss:$36 sps:$4 sm:$0xff]  }
  0x5a   :  { %256 = vmatmul.mubr.bf16.vlgmr.msra.gmra.mrb[0].mxu0 %v62_v26  ;;  %1769 = vmatprep.subr.mxu1 %v2077_v1 }
  0x5b   :  { %1766 = vmatprep.mubr.msk.f32.mxu0 %vm2078_vm0, %v2077_v1 }
  0x5c   :  { %1761 = vmatmul.mubr.bf16.vlgmr.msra.gmra.mrb[0].mxu1 %v62_v26 }
  0x5d   :  { %1771 = vmatprep.mubr.msk.f32.mxu1 %vm2078_vm0, %v2077_v1 }
 0x12d   :  { %v257_v29 = vpop.f32.mrb[0].mxu0 }
 0x12e   :  { %v259_v30 = vpop.f32.mrb[1].mxu0  ;;  %v308_v32 = vrot.slane %v257_v29, 7 }
 0x12f   :  { %v261_v31 = vpop.f32.mrb[2].mxu0  ;;  %1765 = vmatpush3.xpose.msra.mxu0 %v259_v30  ;;  %v300_v35 = vpop.f32.mrb[0].mxu1  ;;  %v1888_v30 = vld [vmem:[#allocation5 + $0x64] ss:$36 sps:$4 sm:$0xff]  }
 0x130   :  { %v263_v33 = vpop.f32.mrb[3].mxu0  ;;  %1774 = vmatprep.subr.mxu0 %v2077_v1  ;;  %v381_v34 = vrot.slane %v261_v31, 7  ;;  %v1762_v36 = vpop.f32.mrb[1].mxu1  ;;  %v1886_v31 = vld [vmem:[#allocation5 + $0x60] ss:$36 sps:$4 sm:$0xff]  }
 0x131   :  { %1770 = vmatpush3.xpose.msra.mxu1 %v263_v33  ;;  %v303_v37 = vpop.f32.mrb[2].mxu1  ;;  %v1892_v33 = vld [vmem:[#allocation5 + $0xa8] ss:$36 sps:$4 sm:$0xff]   ;;  %v1903_v36 = vld [vmem:[#allocation5 + $0x134] ss:$36 sps:$4 sm:$0xff]  }
 0x132   :  { %1767 = vmatmul.mubr.f32.vlgmr.msra.gmra.mrb[4].mxu0 %v308_v32  ;;  %1779 = vmatprep.subr.mxu1 %v2077_v1  ;;  %v1763_v38 = vpop.f32.mrb[3].mxu1  ;;  %v1894_v32 = vld [vmem:[#allocation5 + $0xac] ss:$36 sps:$4 sm:$0xff]  }
 0x133   :  { %1776 = vmatprep.mubr.msk.f32.mxu0 %vm2078_vm0, %v2077_v1  ;;  %1775 = vmatpush3.msra.mxu0 %v300_v35  ;;  %v1898_v35 = vld [vmem:[#allocation5 + $0xf0] ss:$36 sps:$4 sm:$0xff]  }
 0x134   :  { %1772 = vmatmul.mubr.f32.vlgmr.msra.gmra.mrb[4].mxu1 %v381_v34  ;;  %1784 = vmatprep.subr.bf16.mxu0 %v2077_v1  ;;  %v1900_v34 = vld [vmem:[#allocation5 + $0xf4] ss:$36 sps:$4 sm:$0xff]  }
 0x135   :  { %1781 = vmatprep.mubr.msk.f32.mxu1 %vm2078_vm0, %v2077_v1  ;;  %1780 = vmatpush3.msra.mxu1 %v303_v37  ;;  %v1906_v37 = vld [vmem:[#allocation5 + $0x13c] ss:$36 sps:$4 sm:$0xff]   ;;  %v1901_v38 = vld [vmem:[#allocation5 + $0x130] ss:$36 sps:$4 sm:$0xff]  }
 0x136   :  { %977 = vmatprep.subr.bf16.mxu1 %v1879_v8  ;;  %v1927_v8 = vld [vmem:[#allocation7] sm:$0xff]  }
 0x205   :  { %v376_v39 = vpop.f32.mrb[4].mxu0 }
 0x206   :  { %v1768_v40 = vpop.f32.mrb[5].mxu0  ;;  %v454_v44 = vsel %vm453_vm1, %v376_v39, -inf }
 0x207   :  { %v449_v41 = vpop.f32.mrb[4].mxu1  ;;  %v1909_v40 = vld [vmem:[#allocation5 + $0x17c] ss:$36 sps:$4 sm:$0xff]  }
 0x208   :  { %v1773_v42 = vpop.f32.mrb[5].mxu1  ;;  %v457_v43 = vsel %vm453_vm1, %v449_v41, -inf }
 0x209   :  { %458 = vmax.xlane.f32.xlu0 %v457_v43  ;;  %v1910_v42 = vld [vmem:[#allocation5 + $0x180] ss:$36 sps:$4 sm:$0xff]  }
 0x20a   :  { %v1915_v43 = vld [vmem:[#allocation5 + $0x1c4] ss:$36 sps:$4 sm:$0xff]  }
 0x20d   :  { %455 = vmax.xlane.f32.xlu0 %v454_v44  ;;  %v1918_v44 = vld [vmem:[#allocation5 + $0x1cc] ss:$36 sps:$4 sm:$0xff]  }
 0x296   :  { %v459_v45 = vpop.xlane.xlu0 %458 }
 0x297   :  { %v461_v46 = vsub.f32 %v449_v41, %v459_v45  ;;  %v1907_v41 = vld [vmem:[#allocation5 + $0x178] ss:$36 sps:$4 sm:$0xff]   ;;  %v1913_v45 = vld [vmem:[#allocation5 + $0x1c0] ss:$36 sps:$4 sm:$0xff]  }
 0x299   :  { %v464_v47 = vmul.f32 1.442695, %v461_v46  ;;  %v1916_v46 = vld [vmem:[#allocation5 + $0x1c8] ss:$36 sps:$4 sm:$0xff]  }
 0x29a   :  { %v456_v48 = vpop.xlane.xlu0 %455 }
 0x29b   :  { %1965 = vpow2.f32 %v464_v47  ;;  %v460_v49 = vsub.f32 %v376_v39, %v456_v48  ;;  %v1904_v39 = vld [vmem:[#allocation5 + $0x138] ss:$36 sps:$4 sm:$0xff]   ;;  %v1921_v47 = vld [vmem:[#allocation5 + $0x20c] ss:$36 sps:$4 sm:$0xff]  }
 0x29c   :  { %v1924_v48 = vld [vmem:[#allocation5 + $0x214] ss:$36 sps:$4 sm:$0xff]  }
 0x29d   :  { %v462_v50 = vmul.f32 1.442695, %v460_v49  ;;  %v1919_v49 = vld [vmem:[#allocation5 + $0x208] ss:$36 sps:$4 sm:$0xff]  }
 0x29f   :  { %1967 = vpow2.f32 %v462_v50  ;;  %v1922_v50 = vld [vmem:[#allocation5 + $0x210] ss:$36 sps:$4 sm:$0xff]  }
 0x2a5   :  { %v1966_v51 = vpop.eup %1965 }
 0x2a6   :  { %v469_v52 = vsel %vm453_vm1, %v1966_v51, 0.0 }
 0x2a7   :  { %470 = vadd.xlane.f32.xlu1 %v469_v52  ;;  %v1926_v52 = vld [vmem:[#allocation7 + $0xc0] sm:$0xff]  }
 0x2a9   :  { %v1968_v53 = vpop.eup %1967 }
 0x2aa   :  { %v466_v54 = vsel %vm453_vm1, %v1968_v53, 0.0 }
 0x2ab   :  { %467 = vadd.xlane.f32.xlu1 %v466_v54 }
 0x334   :  { %v471_v55 = vpop.xlane.xlu1 %470 }
 0x335   :  { %1969 = vrcp.f32 %v471_v55 }
 0x338   :  { %v468_v56 = vpop.xlane.xlu1 %467 }
 0x339   :  { %1971 = vrcp.f32 %v468_v56 }
 0x33f   :  { %v1970_v57 = vpop.eup %1969 }
 0x340   :  { %v475_v58 = vmul.f32 %v1970_v57, %v1966_v51  ;;  %v1925_v51 = vld [vmem:[#allocation7 + $0x40] sm:$0xff]  }
 0x342   :  { %1782 = vmatmul.mubr.msk.f32.vlgmr.msra.gmra.mrb[6].mxu1 %vm476_vm2, %v475_v58 }
 0x343   :  { %v1972_v59 = vpop.eup %1971  ;;  %1009 = vmatprep.mubr.bf16.mxu1 %v2076_v0  ;;  %978 = vmatpush1.bf16.msra.mxu1 %v1877_v7 }
 0x344   :  { %v474_v61 = vmul.f32 %v1972_v59, %v1968_v53  ;;  %979 = vmatprep.subr.bf16.mxu1 %v1885_v10  ;;  %v1582_v53 = vld [vmem:[%s2238_s3] ss:$0 sm:$0xff] }
 0x346   :  { %1777 = vmatmul.mubr.msk.f32.vlgmr.msra.gmra.mrb[6].mxu0 %vm476_vm2, %v474_v61 }
 0x347   :  { %1785 = vmatpush3.bf16.msra.mxu0 %v1869_v60  ;;  %1800 = vmatprep.mubr.msk.bf16.mxu0 %vm2078_vm0, %v2077_v1 }
 0x348   :  { %1786 = vmatprep.subr.bf16.mxu0 %v2077_v1  ;;  %980 = vmatpush1.bf16.msra.mxu1 %v1883_v11  ;;  %v1930_v11 = vld [vmem:[#allocation7 + $0xc8] sm:$0xff]  }
 0x349   :  { %981 = vmatprep.subr.bf16.mxu1 %v1891_v12  ;;  %v1932_v12 = vld [vmem:[#allocation7 + $0x88] sm:$0xff]  }
 0x34b   :  { %1787 = vmatpush3.bf16.msra.mxu0 %v1870_v62 }
 0x34c   :  { %1788 = vmatprep.subr.bf16.mxu0 %v2077_v1  ;;  %982 = vmatpush1.bf16.msra.mxu1 %v1889_v13  ;;  %v1933_v13 = vld [vmem:[#allocation7 + $0x50] sm:$0xff]  }
 0x34d   :  { %983 = vmatprep.subr.bf16.mxu1 %v1897_v14  ;;  %v1934_v14 = vld [vmem:[#allocation7 + $0xd0] sm:$0xff]  }
 0x34f   :  { %1789 = vmatpush3.bf16.msra.mxu0 %v1871_v63 }
 0x350   :  { %1790 = vmatprep.subr.bf16.mxu0 %v2077_v1  ;;  %984 = vmatpush1.bf16.msra.mxu1 %v1895_v15  ;;  %v1935_v15 = vld [vmem:[#allocation7 + $0x10] sm:$0xff]  }
 0x351   :  { %985 = vmatprep.subr.bf16.mxu1 %v1903_v36  ;;  %v1954_v36 = vld [vmem:[#allocation7 + $0xf8] sm:$0xff]  }
 0x353   :  { %1791 = vmatpush3.bf16.msra.mxu0 %v1872_v2 }
 0x354   :  { %1792 = vmatprep.subr.bf16.mxu0 %v2077_v1  ;;  %986 = vmatpush1.bf16.msra.mxu1 %v1901_v38  ;;  %v1956_v38 = vld [vmem:[#allocation7 + $0xb8] sm:$0xff]  }
 0x355   :  { %987 = vmatprep.subr.bf16.mxu1 %v1909_v40 }
 0x357   :  { %1793 = vmatpush3.bf16.msra.mxu0 %v1873_v3 }
 0x358   :  { %1794 = vmatprep.subr.bf16.mxu0 %v2077_v1  ;;  %988 = vmatpush1.bf16.msra.mxu1 %v1907_v41 }
 0x359   :  { %989 = vmatprep.subr.bf16.mxu1 %v1915_v43 }
 0x35b   :  { %1795 = vmatpush3.bf16.msra.mxu0 %v1874_v4 }
 0x35c   :  { %1796 = vmatprep.subr.bf16.mxu0 %v2077_v1  ;;  %990 = vmatpush1.bf16.msra.mxu1 %v1913_v45 }
 0x35d   :  { %991 = vmatprep.subr.bf16.mxu1 %v1921_v47 }
 0x35f   :  { %1797 = vmatpush3.bf16.msra.mxu0 %v1875_v5 }
 0x360   :  { %1798 = vmatprep.subr.bf16.mxu0 %v2077_v1  ;;  %992 = vmatpush1.bf16.msra.mxu1 %v1919_v49 }
 0x361   :  { %1691 = vmatprep.subr.bf16.mxu1 %v1925_v51 }
 0x363   :  { %1799 = vmatpush3.bf16.msra.mxu0 %v1876_v6 }
 0x364   :  { %1018 = vmatprep.subr.bf16.mxu0 %v1882_v9  ;;  %v1928_v9 = vld [vmem:[#allocation7 + $0x80] sm:$0xff]  }
 0x415   :  { %v619_v16 = vpop.f32.mrb[6].mxu1 }
 0x416   :  { %v624_v17 = vpack.c.bf16 %v619_v16, %v619_v16  ;;  %v1783_v18 = vpop.f32.mrb[7].mxu1  ;;  %v1936_v16 = vld [vmem:[#allocation7 + $0x90] sm:$0xff]  }
 0x417   :  { %v1938_v18 = vld [vmem:[#allocation7 + $0xd8] sm:$0xff]  }
 0x418   :  { %v651_v19 = vunpack.c.l.b16 %v624_v17  ;;  %v1937_v17 = vld [vmem:[#allocation7 + $0x58] sm:$0xff]  }
 0x419   :  { %v546_v20 = vpop.f32.mrb[6].mxu0 }
 0x41a   :  { %v623_v21 = vpack.c.bf16 %v546_v20, %v546_v20  ;;  %v1778_v22 = vpop.f32.mrb[7].mxu0  ;;  %v652_v25 = vrot.slane %v651_v19, 7  ;;  %v1939_v19 = vld [vmem:[#allocation7 + $0x18] sm:$0xff]  }
 0x41b   :  { %v1940_v20 = vld [vmem:[#allocation7 + $0x98] sm:$0xff]   ;;  %v1942_v22 = vld [vmem:[#allocation7 + $0xe0] sm:$0xff]  }
 0x41c   :  { %v650_v26 = vunpack.c.l.b16 %v623_v21  ;;  %v1941_v21 = vld [vmem:[#allocation7 + $0x60] sm:$0xff]  }
 0x41e   :  { %v654_v27 = vsel %vm653_vm3, %v652_v25, %v650_v26  ;;  %v1943_v25 = vld [vmem:[#allocation7 + $0x20] sm:$0xff]  }
 0x41f   :  { %v655_v29 = vpack.c.b16 %v654_v27, %v654_v27  ;;  %v1944_v26 = vld [vmem:[#allocation7 + $0xa0] sm:$0xff]   ;;  %v1945_v27 = vld [vmem:[#allocation7 + $0x68] sm:$0xff]  }
 0x421   :  { %1801 = vmatmul.mubr.bf16.vlgmr.msra.gmra.mrb[8].mxu0 %v655_v29  ;;  %v1947_v29 = vld [vmem:[#allocation7 + $0x28] sm:$0xff]  }
 0x422   :  { %1019 = vmatpush1.bf16.msra.mxu0 %v1880_v28  ;;  %1050 = vmatprep.mubr.bf16.mxu0 %v2076_v0  ;;  %v1912_v0 = vld [vmem:[#allocation5 + $0x184] ss:$36 sps:$4 sm:$0xff]  }
 0x423   :  { %1020 = vmatprep.subr.bf16.mxu0 %v1888_v30  ;;  %v1946_v28 = vld [vmem:[#allocation7 + $0xe8] sm:$0xff]  }
 0x424   :  { %v1948_v30 = vld [vmem:[#allocation7 + $0xa8] sm:$0xff]  }
 0x426   :  { %1021 = vmatpush1.bf16.msra.mxu0 %v1886_v31  ;;  %v1949_v31 = vld [vmem:[#allocation7 + $0x70] sm:$0xff]  }
 0x427   :  { %1022 = vmatprep.subr.bf16.mxu0 %v1894_v32  ;;  %v1950_v32 = vld [vmem:[#allocation7 + $0xf0] sm:$0xff]  }
 0x42a   :  { %1023 = vmatpush1.bf16.msra.mxu0 %v1892_v33  ;;  %v1951_v33 = vld [vmem:[#allocation7 + $0x30] sm:$0xff]  }
 0x42b   :  { %1024 = vmatprep.subr.bf16.mxu0 %v1900_v34  ;;  %v1952_v34 = vld [vmem:[#allocation7 + $0xb0] sm:$0xff]  }
 0x42e   :  { %1025 = vmatpush1.bf16.msra.mxu0 %v1898_v35  ;;  %v1953_v35 = vld [vmem:[#allocation7 + $0x78] sm:$0xff]  }
 0x42f   :  { %1026 = vmatprep.subr.bf16.mxu0 %v1906_v37  ;;  %v1955_v37 = vld [vmem:[#allocation7 + $0x38] sm:$0xff]  }
 0x432   :  { %1027 = vmatpush1.bf16.msra.mxu0 %v1904_v39  ;;  %v788_v39 = vlaneseq }
 0x433   :  { %1028 = vmatprep.subr.bf16.mxu0 %v1912_v0 }
 0x434   :  { %v789_v40 = vshrl.u32 %v788_v39, 7 }
 0x436   :  { %1029 = vmatpush1.bf16.msra.mxu0 %v1910_v42  ;;  %v790_v0 = vsub.s32 0, %v789_v40  ;;  %v798_v41 = vsub.s32 2, %v789_v40  ;;  %v786_v42 = vld [vmem:[%s2238_s3 + $0x1] sm:$0xf]  ;;  %v794_v43 = vsub.s32 1, %v789_v40 }
 0x437   :  { %1030 = vmatprep.subr.bf16.mxu0 %v1918_v44  ;;  %v802_v44 = vsub.s32 3, %v789_v40 }
 0x438   :  { %v791_v45 = vrot.slane %v786_v42, %v790_v0  ;;  %v795_v47 = vrot.slane %v786_v42, %v794_v43  ;;  %v1656_v0 = vld [vmem:[%s2238_s3 + $0x6] ss:$0 sm:$0xff] }
 0x43a   :  { %1031 = vmatpush1.bf16.msra.mxu0 %v1916_v46  ;;  %v799_v46 = vrot.slane %v786_v42, %v798_v41 }
 0x43b   :  { %1032 = vmatprep.subr.bf16.mxu0 %v1924_v48  ;;  %v803_v48 = vrot.slane %v786_v42, %v802_v44 }
 0x43e   :  { %1033 = vmatpush1.bf16.msra.mxu0 %v1922_v50 }
 0x43f   :  { %1713 = vmatprep.subr.bf16.mxu0 %v1926_v52 }
 0x4f4   :  { %v739_v54 = vpop.f32.mrb[8].mxu0 }
 0x4f5   :  { %v740_v55 = vadd.f32 %v1582_v53, %v739_v54  ;;  %v1802_v56 = vpop.f32.mrb[9].mxu0 }
 0x4f6   :  { %v742_v57 = vpop.f32.mrb[10].mxu0 }
 0x4f7   :  { %v746_v58 = vrot.slane %v740_v55, 1  ;;  %v747_v59 = vrot.slane %v740_v55, 2  ;;  %v1803_v60 = vpop.f32.mrb[11].mxu0 }
 0x4f9   :  { %v2191_v61 = vadd.f32 %v746_v58, %v2148_v23  ;;  %v2194_v62 = vadd.f32 %v747_v59, %v2150_v24  ;;  %v1929_v23 = vld [vmem:[#allocation7 + $0x48] sm:$0xff]  }
 0x4fa   :  { %v1931_v24 = vld [vmem:[#allocation7 + $0x8] sm:$0xff]  }
 0x4fb   :  { %v752_v63 = vpack.c.bf16 %v2191_v61, %v2191_v61  ;;  %v753_v2 = vpack.c.bf16 %v2194_v62, %v2194_v62 }
 0x4fd   :  { %v810_v3 = vunpack.c.l.b16 %v752_v63  ;;  %v811_v4 = vunpack.c.l.b16 %v753_v2 }
 0x4ff   :  { %v812_v5 = vrot.slane %v810_v3, 7  ;;  %v813_v6 = vrot.slane %v811_v4, 6 }
 0x501   :  { %v814_v7 = vsel %vm653_vm3, %v813_v6, %v812_v5 }
 0x502   :  { %v815_v10 = vpack.c.b16 %v814_v7, %v814_v7  ;;  %v1957_v7 = vld [vmem:[#allocation5 + $0x20] ss:$36 sps:$4 sm:$0xff]  }
 0x504   :  { %1010 = vmatmul.mubr.bf16.vlgmr.msra.gmra.mrb[8].mxu1 %v815_v10  ;;  %1051 = vmatmul.mubr.bf16.vlgmr.msra.gmra.mrb[12].mxu0 %v815_v10  ;;  %v1958_v10 = vld [vmem:[#allocation5 + $0x68] ss:$36 sps:$4 sm:$0xff]  }
 0x505   :  { %1692 = vmatpush3.bf16.msra.mxu1 %v1927_v8  ;;  %1714 = vmatpush3.bf16.msra.mxu0 %v1928_v9 }
 0x506   :  { %1693 = vmatprep.subr.bf16.mxu1 %v1929_v23  ;;  %1715 = vmatprep.subr.bf16.mxu0 %v1930_v11  ;;  %v1959_v23 = vld [vmem:[#allocation5 + $0xb0] ss:$36 sps:$4 sm:$0xff]   ;;  %v1960_v11 = vld [vmem:[#allocation5 + $0xf8] ss:$36 sps:$4 sm:$0xff]  }
 0x509   :  { %1694 = vmatpush3.bf16.msra.mxu1 %v1931_v24  ;;  %1716 = vmatpush3.bf16.msra.mxu0 %v1932_v12  ;;  %v1961_v24 = vld [vmem:[#allocation5 + $0x140] ss:$36 sps:$4 sm:$0xff]   ;;  %v1962_v12 = vld [vmem:[#allocation5 + $0x188] ss:$36 sps:$4 sm:$0xff]  }
 0x50a   :  { %1695 = vmatprep.subr.bf16.mxu1 %v1933_v13  ;;  %1717 = vmatprep.subr.bf16.mxu0 %v1934_v14  ;;  %v1963_v13 = vld [vmem:[#allocation5 + $0x1d0] ss:$36 sps:$4 sm:$0xff]   ;;  %v1964_v14 = vld [vmem:[#allocation5 + $0x218] ss:$36 sps:$4 sm:$0xff]  }
 0x50d   :  { %1696 = vmatpush3.bf16.msra.mxu1 %v1935_v15  ;;  %1718 = vmatpush3.bf16.msra.mxu0 %v1936_v16 }
 0x50e   :  { %1697 = vmatprep.subr.bf16.mxu1 %v1937_v17  ;;  %1719 = vmatprep.subr.bf16.mxu0 %v1938_v18  ;;  %v1623_v17 = vld [vmem:[%s2238_s3 + $0x5] ss:$0 sm:$0xff] }
 0x511   :  { %1698 = vmatpush3.bf16.msra.mxu1 %v1939_v19  ;;  %1720 = vmatpush3.bf16.msra.mxu0 %v1940_v20 }
 0x512   :  { %1699 = vmatprep.subr.bf16.mxu1 %v1941_v21  ;;  %1721 = vmatprep.subr.bf16.mxu0 %v1942_v22 }
 0x515   :  { %1700 = vmatpush3.bf16.msra.mxu1 %v1943_v25  ;;  %1722 = vmatpush3.bf16.msra.mxu0 %v1944_v26 }
 0x516   :  { %1701 = vmatprep.subr.bf16.mxu1 %v1945_v27  ;;  %1723 = vmatprep.subr.bf16.mxu0 %v1946_v28 }
 0x519   :  { %1702 = vmatpush3.bf16.msra.mxu1 %v1947_v29  ;;  %1724 = vmatpush3.bf16.msra.mxu0 %v1948_v30 }
 0x51a   :  { %1703 = vmatprep.subr.bf16.mxu1 %v1949_v31  ;;  %1725 = vmatprep.subr.bf16.mxu0 %v1950_v32 }
 0x51d   :  { %1704 = vmatpush3.bf16.msra.mxu1 %v1951_v33  ;;  %1726 = vmatpush3.bf16.msra.mxu0 %v1952_v34 }
 0x51e   :  { %1705 = vmatprep.subr.bf16.mxu1 %v1953_v35  ;;  %1727 = vmatprep.subr.bf16.mxu0 %v1954_v36 }
 0x521   :  { %1706 = vmatpush3.bf16.msra.mxu1 %v1955_v37  ;;  %1728 = vmatpush3.bf16.msra.mxu0 %v1956_v38 }
 0x522   :  { %1804 = vmatprep.subr.bf16.mxu1 %v2077_v1 }
 0x5d7   :  { %v1011_v49 = vpop.f32.mrb[8].mxu1  ;;  %v1052_v50 = vpop.f32.mrb[12].mxu0 }
 0x5d8   :  { %v1012_v51 = vadd.f32 %v1011_v49, %v791_v45  ;;  %v1053_v52 = vadd.f32 %v1052_v50, %v799_v46  ;;  %v1013_v53 = vpop.f32.mrb[9].mxu1  ;;  %v1054_v54 = vpop.f32.mrb[13].mxu0 }
 0x5d9   :  { %v1014_v55 = vadd.f32 %v1013_v53, %v795_v47  ;;  %v1055_v56 = vadd.f32 %v1054_v54, %v803_v48  ;;  %v1015_v57 = vpop.f32.mrb[10].mxu1  ;;  %v1056_v58 = vpop.f32.mrb[14].mxu0 }
 0x5da   :  { %v1059_v59 = vmax.f32 %v1012_v51, 0.0  ;;  %v1061_v60 = vmax.f32 %v1053_v52, 0.0  ;;  %v1016_v63 = vpop.f32.mrb[11].mxu1  ;;  %v1057_v2 = vpop.f32.mrb[15].mxu0 }
 0x5db   :  { %v1060_v3 = vmax.f32 %v1014_v55, 0.0  ;;  %v1062_v4 = vmax.f32 %v1055_v56, 0.0 }
 0x5dc   :  { %v1063_v8 = vpack.c.bf16 %v1059_v59, %v1059_v59  ;;  %v1065_v9 = vpack.c.bf16 %v1061_v60, %v1061_v60 }
 0x5dd   :  { %v1064_v5 = vpack.c.bf16 %v1060_v3, %v1060_v3  ;;  %v1066_v6 = vpack.c.bf16 %v1062_v4, %v1062_v4 }
 0x5df   :  { %1362 = vmatprep.mubr.bf16.mxu1 %v1064_v5  ;;  %1402 = vmatprep.mubr.bf16.mxu0 %v1066_v6 }
 0x5e0   :  { %1363 = vmatmul.mubr.bf16.vlgmr.msra.gmra.mrb[12].mxu1 %v1063_v8  ;;  %1403 = vmatmul.mubr.bf16.vlgmr.msra.gmra.mrb[16].mxu0 %v1065_v9 }
 0x5e1   :  { %1805 = vmatpush3.bf16.msra.mxu1 %v1957_v7  ;;  %1820 = vmatprep.mubr.msk.bf16.mxu1 %vm2078_vm0, %v2077_v1 }
 0x5e2   :  { %1806 = vmatprep.subr.bf16.mxu1 %v2077_v1 }
 0x5e5   :  { %1807 = vmatpush3.bf16.msra.mxu1 %v1958_v10 }
 0x5e6   :  { %1808 = vmatprep.subr.bf16.mxu1 %v2077_v1 }
 0x5e9   :  { %1809 = vmatpush3.bf16.msra.mxu1 %v1959_v23 }
 0x5ea   :  { %1810 = vmatprep.subr.bf16.mxu1 %v2077_v1 }
 0x5ed   :  { %1811 = vmatpush3.bf16.msra.mxu1 %v1960_v11 }
 0x5ee   :  { %1812 = vmatprep.subr.bf16.mxu1 %v2077_v1 }
 0x5f1   :  { %1813 = vmatpush3.bf16.msra.mxu1 %v1961_v24 }
 0x5f2   :  { %1814 = vmatprep.subr.bf16.mxu1 %v2077_v1 }
 0x5f5   :  { %1815 = vmatpush3.bf16.msra.mxu1 %v1962_v12 }
 0x5f6   :  { %1816 = vmatprep.subr.bf16.mxu1 %v2077_v1 }
 0x5f9   :  { %1817 = vmatpush3.bf16.msra.mxu1 %v1963_v13 }
 0x5fa   :  { %1818 = vmatprep.subr.bf16.mxu1 %v2077_v1 }
 0x5fd   :  { %1819 = vmatpush3.bf16.msra.mxu1 %v1964_v14 }
 0x6b3   :  { %v1707_v15 = vpop.f32.mrb[12].mxu1  ;;  %v1729_v16 = vpop.f32.mrb[16].mxu0 }
 0x6b4   :  { %v1708_v18 = vpop.f32.mrb[13].mxu1  ;;  %v1730_v19 = vpop.f32.mrb[17].mxu0 }
 0x6b5   :  { %v1709_v20 = vadd.f32 %v1708_v18, %v1707_v15  ;;  %v1731_v21 = vadd.f32 %v1730_v19, %v1729_v16  ;;  %v1710_v22 = vpop.f32.mrb[14].mxu1  ;;  %v1732_v25 = vpop.f32.mrb[18].mxu0 }
 0x6b6   :  { %v1711_v26 = vpop.f32.mrb[15].mxu1  ;;  %v1733_v27 = vpop.f32.mrb[19].mxu0 }
 0x6b7   :  { %v1365_v28 = vadd.f32 %v1709_v20, %v1623_v17 }
 0x6b9   :  { %v1405_v29 = vadd.f32 %v1731_v21, %v1365_v28 }
 0x6bb   :  { %v1411_v30 = vrot.slane %v1405_v29, 1  ;;  %v1412_v1 = vrot.slane %v1405_v29, 2 }
 0x6bd   :  { %v1415_v31 = vadd.f32 %v1411_v30, %v2191_v61  ;;  %v1416_v32 = vadd.f32 %v1412_v1, %v2194_v62 }
 0x6bf   :  { %v1417_v33 = vpack.c.bf16 %v1415_v31, %v1415_v31  ;;  %v1418_v34 = vpack.c.bf16 %v1416_v32, %v1416_v32 }
 0x6c1   :  { %v1444_v35 = vunpack.c.l.b16 %v1417_v33  ;;  %v1445_v36 = vunpack.c.l.b16 %v1418_v34 }
 0x6c3   :  { %v1446_v37 = vrot.slane %v1444_v35, 7  ;;  %v1447_v38 = vrot.slane %v1445_v36, 6 }
 0x6c5   :  { %v1448_v39 = vsel %vm653_vm3, %v1447_v38, %v1446_v37 }
 0x6c6   :  { %v1449_v40 = vpack.c.b16 %v1448_v39, %v1448_v39 }
 0x6c8   :  { %1821 = vmatmul.mubr.bf16.vlgmr.msra.gmra.mrb[16].mxu1 %v1449_v40 }
 0x79b   :  { %v1533_v41 = vpop.f32.mrb[16].mxu1 }
 0x79c   :  { %v1534_v61 = vadd.f32 %v1656_v0, %v1533_v41  ;;  %v1822_v42 = vpop.f32.mrb[17].mxu1 }
 0x79d   :  { %v1536_v62 = vpop.f32.mrb[18].mxu1 }
 0x79e   :  { %1539 = vst [vmem:[#allocation8] sm:$0x3] %v1534_v61  ;;  %v1823_v43 = vpop.f32.mrb[19].mxu1 }
 0x79f   :  { %2050 = shalt.err (!%p2047_p0)
}
 0x7a0   :  { %s2051_s3 = scalar_lea.hbm %s2239_s4, 32 }
 0x7a1   :  { %p2052_p1 = scmp.ne.s32.totalorder %s2239_s4, %s2051_s3  ;;  %p2055_p2 = scmp.lt.u32.totalorder %s2051_s3, %s2239_s4 }
 0x7a3   :  { %p2057_p3 = pnand %p2055_p2, %p2052_p1 }
 0x7a5   :  { %2060 = shalt.err (!%p2057_p3)
}
 0x7a6   :  { %1549 = dma.vmem_to_hbm [thread:$0]  %s1547_s11, 32, %s2239_s4, [#allocation4]  }
 0x7a7   :  { %2065 = dma.done.wait [#allocation4], 32  }
 0x7a8   :  { %2066 = vsyncadd [#allocation4], 4294967264 }
 0x7a9   :  { %1553 = vsyncpa [#allocation3], 1 }
 0x7aa   :  { %1554 = vsyncpa [#allocation6], 1 }
 0x7ab   :  { %1555 = vsyncpa [#allocation4], 1 }

</bundles_post_ra>
